<compile_context>
chip_gen: v7x
topology: tpu7x:2x2x1
jax: 0.10.0
libtpu: 0.0.40
codegen_flags: <defaults>
</compile_context>

<pallas_src>
import functools

import jax
import jax.numpy as jnp
from jax.experimental import pallas as pl
from jax.experimental.pallas import tpu as pltpu

MATMUL_DTYPE = jnp.bfloat16   # MXU operand dtype; accumulation is always f32


def _layernorm_f32(v, w, b):
    """LayerNorm computed in fp32 (matches the fp16-safe LayerNorm subclass)."""
    v32 = v.astype(jnp.float32)
    mu = jnp.mean(v32, axis=-1, keepdims=True)
    var = jnp.mean((v32 - mu) ** 2, axis=-1, keepdims=True)
    return (v32 - mu) * jax.lax.rsqrt(var + 1e-5) * w + b


# ----------------------------------------------------------------------------
# One ResidualAttentionBlock as a fused Pallas kernel.
# Grid: (batch, query-tiles). Each grid step sees one (TQ, E) query/residual
# tile plus the full (L, E) sequence (for keys/values) and the resident weights.
# ----------------------------------------------------------------------------
def resblock_kernel(xt_ref, xf_ref,
                    ln1w_ref, ln1b_ref,
                    wq_ref, bq_ref,
                    wkv_ref, bkv_ref,
                    wo_ref, bo_ref,
                    ln2w_ref, ln2b_ref,
                    wfc_ref, bfc_ref,
                    wpj_ref, bpj_ref,
                    o_ref,
                    attn_acc_ref,
                    *, n_head):
    f32 = jnp.float32
    cdt = MATMUL_DTYPE

    xt = xt_ref[...].astype(f32)              # (TQ, E) query / residual tile
    xf = xf_ref[...].astype(f32)              # (L, E)  full sequence (K/V)
    TQ, E = xt.shape
    L = xf.shape[0]
    H = n_head
    Dh = E // H
    scale = 1.0 / (Dh ** 0.5)

    # ---- x = x + attn(ln_1(x)) ---------------------------------------------
    ht = _layernorm_f32(xt, ln1w_ref[...], ln1b_ref[...])
    hf = _layernorm_f32(xf, ln1w_ref[...], ln1b_ref[...])

    # Weights are pre-transposed on the host -> plain `act @ w` matmuls,
    # bf16 operands on the MXU, f32 accumulation.
    q2 = jnp.dot(ht.astype(cdt), wq_ref[...],
                 preferred_element_type=f32) + bq_ref[...]           # (TQ, E)
    kv = jnp.dot(hf.astype(cdt), wkv_ref[...],
                 preferred_element_type=f32) + bkv_ref[...]          # (L, 2E)
    # TODO(synk): when num_q_tiles > 1 the K/V projection is recomputed per
    # query tile; for long sequences hoist it into a separate qkv kernel.
    k2 = kv[:, :E]
    v2 = kv[:, E:]

    def split_heads(t):          # (X, E) -> (H, X, Dh) batched-head layout
        return jnp.stack([t[:, h * Dh:(h + 1) * Dh] for h in range(H)], axis=0)

    qh = split_heads(q2).astype(cdt)          # (H, TQ, Dh)
    kh = split_heads(k2).astype(cdt)          # (H, L,  Dh)
    vh = split_heads(v2).astype(cdt)          # (H, L,  Dh)

    # Batched (over heads) score / value matmuls keep the MXU fed.
    s = jnp.einsum('hqd,hkd->hqk', qh, kh,
                   preferred_element_type=f32) * scale               # (H, TQ, L)
    # TODO(synk): attn_mask is None in this instantiation; add `s += mask`
    # here if a mask is provided.
    s = s - jnp.max(s, axis=-1, keepdims=True)
    p = jnp.exp(s)
    p = p * pl.reciprocal(jnp.sum(p, axis=-1, keepdims=True), approx=True)
    ctx = jnp.einsum('hqk,hkd->hqd', p.astype(cdt), vh,
                     preferred_element_type=f32)                     # (H, TQ, Dh)

    # Merge heads into a VMEM scratch (no concatenate), then one
    # full-contraction (K = E) output projection.
    for h in range(H):
        attn_acc_ref[:, h * Dh:(h + 1) * Dh] = ctx[h]
    attn = jnp.dot(attn_acc_ref[...].astype(cdt), wo_ref[...],
                   preferred_element_type=f32) + bo_ref[...]         # (TQ, E)
    x = xt + attn

    # ---- x = x + mlp(ln_2(x)) ------------------------------------------------
    h2 = _layernorm_f32(x, ln2w_ref[...], ln2b_ref[...])
    fc = jnp.dot(h2.astype(cdt), wfc_ref[...],
                 preferred_element_type=f32) + bfc_ref[...]          # (TQ, 4E)
    fc = fc * jax.nn.sigmoid(1.702 * fc)                             # QuickGELU
    pj = jnp.dot(fc.astype(cdt), wpj_ref[...],
                 preferred_element_type=f32) + bpj_ref[...]          # (TQ, E)
    x = x + pj

    o_ref[...] = x.astype(o_ref.dtype)


def _pick_tq(L):
    """Largest query-tile that divides L and respects the (8, 128) rule."""
    if L <= 256:
        return L                      # block equals the full dim -> always legal
    for t in (512, 256, 128, 64, 32, 16, 8):
        if t <= L and L % t == 0:
            return t
    return L


def run_resblock(x_nle, params, n_head):
    """x_nle: (N, L, E) batch-major activations; params: dict of weights."""
    N, L, E = x_nle.shape
    TQ = _pick_tq(L)
    n_qt = L // TQ

    weights = [params[k] for k in (
        "ln1_w", "ln1_b", "wq", "bq", "wkv", "bkv", "wo", "bo",
        "ln2_w", "ln2_b", "wfc", "bfc", "wpj", "bpj")]

    def wspec(arr):
        # Full-array, constant-index block: weights stay resident in VMEM.
        return pl.BlockSpec(arr.shape, lambda b, q: (0,) * arr.ndim)

    kernel = functools.partial(resblock_kernel, n_head=n_head)

    weight_bytes = sum(int(w.size) * w.dtype.itemsize for w in weights)
    flops = int(N * L * E * (24 * E + 4 * L))
    transcendentals = int(N * L * (n_head * L + 4 * E))
    bytes_accessed = int(weight_bytes + 2 * N * L * E * 4 + n_qt * N * L * E * 4)

    # VMEM budget: resident weights + double-buffered activation blocks
    # + fp32 intermediates; clamp to a size every generation can hold (<=64MiB).
    interm_bytes = 4 * (3 * L * E + n_head * TQ * L + 4 * TQ * E + 4 * TQ * E)
    act_bytes = 4 * 2 * (L * E + 2 * TQ * E)
    vmem_limit = int(min(max(2 * weight_bytes + act_bytes + 2 * interm_bytes,
                             32 * 1024 * 1024), 64 * 1024 * 1024))

    return pl.pallas_call(
        kernel,
        out_shape=jax.ShapeDtypeStruct((N, L, E), x_nle.dtype),
        grid_spec=pltpu.PrefetchScalarGridSpec(
            num_scalar_prefetch=0,
            grid=(N, n_qt),
            in_specs=[pl.BlockSpec((None, TQ, E), lambda b, q: (b, q, 0)),
                      pl.BlockSpec((None, L, E), lambda b, q: (b, 0, 0))]
                     + [wspec(w) for w in weights],
            out_specs=pl.BlockSpec((None, TQ, E), lambda b, q: (b, q, 0)),
            scratch_shapes=[pltpu.VMEM((TQ, E), jnp.float32)],
        ),
        compiler_params=pltpu.CompilerParams(
            dimension_semantics=("parallel", "parallel"),
            vmem_limit_bytes=vmem_limit),
        cost_estimate=pl.CostEstimate(
            flops=flops, transcendentals=transcendentals,
            bytes_accessed=bytes_accessed),
    )(x_nle, x_nle, *weights)


# ----------------------------------------------------------------------------
# Deterministic parameter construction. Weights are stored in the
# kernel-friendly (in, out) layout, i.e. already transposed / split relative
# to the PyTorch module:
#   wq  = in_proj_weight[:E].T   wkv = in_proj_weight[E:].T   wo = out_proj.weight.T
#   wfc = c_fc.weight.T          wpj = c_proj.weight.T
# ----------------------------------------------------------------------------
def make_layer_params(key, width):
    E = width
    ks = jax.random.split(key, 7)
    s = 0.02
    wdt = MATMUL_DTYPE
    return {
        # LayerNorm params fp32, shaped (1, E) so they broadcast over rows.
        "ln1_w": jnp.ones((1, E), jnp.float32),
        "ln1_b": jnp.zeros((1, E), jnp.float32),
        "wq": (s * jax.random.normal(ks[0], (E, E))).astype(wdt),
        "bq": jnp.zeros((1, E), jnp.float32),
        "wkv": (s * jax.random.normal(ks[1], (E, 2 * E))).astype(wdt),
        "bkv": jnp.zeros((1, 2 * E), jnp.float32),
        "wo": (s * jax.random.normal(ks[2], (E, E))).astype(wdt),
        "bo": jnp.zeros((1, E), jnp.float32),
        "ln2_w": jnp.ones((1, E), jnp.float32),
        "ln2_b": jnp.zeros((1, E), jnp.float32),
        "wfc": (s * jax.random.normal(ks[3], (E, 4 * E))).astype(wdt),
        "bfc": (s * jax.random.normal(ks[4], (1, 4 * E))).astype(jnp.float32),
        "wpj": (s * jax.random.normal(ks[5], (4 * E, E))).astype(wdt),
        "bpj": (s * jax.random.normal(ks[6], (1, E))).astype(jnp.float32),
    }


@functools.partial(jax.jit, static_argnums=2)
def transformer_forward(x_lne, layer_params, n_head):
    """Matches Transformer.forward: x is (L, N, E), returns (L, N, E)."""
    x = jnp.transpose(x_lne, (1, 0, 2))          # -> (N, L, E) for the kernel
    for params in layer_params:
        x = run_resblock(x, params, n_head)
    return jnp.transpose(x, (1, 0, 2))           # back to (L, N, E)


if __name__ == "__main__":
    # Small shapes: width=32, layers=2, heads=4, seq=8, batch=2
    WIDTH, LAYERS, HEADS = 32, 2, 4
    SEQ, BATCH = 8, 2

    key = jax.random.PRNGKey(0)
    kx, kp = jax.random.split(key)
    x = jax.random.normal(kx, (SEQ, BATCH, WIDTH), dtype=jnp.float32)

    layer_keys = jax.random.split(kp, LAYERS)
    layer_params = tuple(make_layer_params(k, WIDTH) for k in layer_keys)

    out = transformer_forward(x, layer_params, HEADS)
    out = jax.block_until_ready(out)

    assert out.shape == (SEQ, BATCH, WIDTH)
    assert bool(jnp.all(jnp.isfinite(out)))
    print("KERNEL_OK")
</pallas_src>

<mosaic_0001>
module attributes {stable_mosaic.version = 11 : i64} {
  func.func @resblock_kernel(%arg0: i32, %arg1: i32, %arg2: memref<1x8x32xf32, #tpu.memory_space<vmem>>, %arg3: memref<1x8x32xf32, #tpu.memory_space<vmem>>, %arg4: memref<1x32xf32, #tpu.memory_space<vmem>>, %arg5: memref<1x32xf32, #tpu.memory_space<vmem>>, %arg6: memref<32x32xbf16, #tpu.memory_space<vmem>>, %arg7: memref<1x32xf32, #tpu.memory_space<vmem>>, %arg8: memref<32x64xbf16, #tpu.memory_space<vmem>>, %arg9: memref<1x64xf32, #tpu.memory_space<vmem>>, %arg10: memref<32x32xbf16, #tpu.memory_space<vmem>>, %arg11: memref<1x32xf32, #tpu.memory_space<vmem>>, %arg12: memref<1x32xf32, #tpu.memory_space<vmem>>, %arg13: memref<1x32xf32, #tpu.memory_space<vmem>>, %arg14: memref<32x128xbf16, #tpu.memory_space<vmem>>, %arg15: memref<1x128xf32, #tpu.memory_space<vmem>>, %arg16: memref<128x32xbf16, #tpu.memory_space<vmem>>, %arg17: memref<1x32xf32, #tpu.memory_space<vmem>>, %arg18: memref<1x8x32xf32, #tpu.memory_space<vmem>>, %arg19: memref<8x32xf32, #tpu.memory_space<vmem>>) attributes {dimension_semantics = [#tpu.dimension_semantics<parallel>, #tpu.dimension_semantics<parallel>], iteration_bounds = array<i64: 2, 1>, scalar_prefetch = 0 : i64, scratch_operands = 1 : i64, tpu.core_type = #tpu.core_type<tc>, window_params = [{transform_indices = @transform_0, window_bounds = array<i64: 1, 8, 32>}, {transform_indices = @transform_1, window_bounds = array<i64: 1, 8, 32>}, {pipeline_mode = #tpu.pipeline_mode<synchronous>, transform_indices = @transform_2, window_bounds = array<i64: 1, 32>}, {pipeline_mode = #tpu.pipeline_mode<synchronous>, transform_indices = @transform_3, window_bounds = array<i64: 1, 32>}, {pipeline_mode = #tpu.pipeline_mode<synchronous>, transform_indices = @transform_4, window_bounds = array<i64: 32, 32>}, {pipeline_mode = #tpu.pipeline_mode<synchronous>, transform_indices = @transform_5, window_bounds = array<i64: 1, 32>}, {pipeline_mode = #tpu.pipeline_mode<synchronous>, transform_indices = @transform_6, window_bounds = array<i64: 32, 64>}, {pipeline_mode = #tpu.pipeline_mode<synchronous>, transform_indices = @transform_7, window_bounds = array<i64: 1, 64>}, {pipeline_mode = #tpu.pipeline_mode<synchronous>, transform_indices = @transform_8, window_bounds = array<i64: 32, 32>}, {pipeline_mode = #tpu.pipeline_mode<synchronous>, transform_indices = @transform_9, window_bounds = array<i64: 1, 32>}, {pipeline_mode = #tpu.pipeline_mode<synchronous>, transform_indices = @transform_10, window_bounds = array<i64: 1, 32>}, {pipeline_mode = #tpu.pipeline_mode<synchronous>, transform_indices = @transform_11, window_bounds = array<i64: 1, 32>}, {pipeline_mode = #tpu.pipeline_mode<synchronous>, transform_indices = @transform_12, window_bounds = array<i64: 32, 128>}, {pipeline_mode = #tpu.pipeline_mode<synchronous>, transform_indices = @transform_13, window_bounds = array<i64: 1, 128>}, {pipeline_mode = #tpu.pipeline_mode<synchronous>, transform_indices = @transform_14, window_bounds = array<i64: 128, 32>}, {pipeline_mode = #tpu.pipeline_mode<synchronous>, transform_indices = @transform_15, window_bounds = array<i64: 1, 32>}, {transform_indices = @transform_16, window_bounds = array<i64: 1, 8, 32>}]} {
    %c0 = arith.constant 0 : index
    %c0_0 = arith.constant 0 : index
    %c0_1 = arith.constant 0 : index
    %0 = vector.load %arg2[%c0, %c0_0, %c0_1] : memref<1x8x32xf32, #tpu.memory_space<vmem>>, vector<1x8x32xf32>
    %1 = vector.shape_cast %0 : vector<1x8x32xf32> to vector<8x32xf32>
    %c0_2 = arith.constant 0 : index
    %c0_3 = arith.constant 0 : index
    %c0_4 = arith.constant 0 : index
    %2 = vector.load %arg3[%c0_2, %c0_3, %c0_4] : memref<1x8x32xf32, #tpu.memory_space<vmem>>, vector<1x8x32xf32>
    %3 = vector.shape_cast %2 : vector<1x8x32xf32> to vector<8x32xf32>
    %c0_5 = arith.constant 0 : index
    %c0_6 = arith.constant 0 : index
    %4 = vector.load %arg4[%c0_5, %c0_6] : memref<1x32xf32, #tpu.memory_space<vmem>>, vector<1x32xf32>
    %c0_7 = arith.constant 0 : index
    %c0_8 = arith.constant 0 : index
    %5 = vector.load %arg5[%c0_7, %c0_8] : memref<1x32xf32, #tpu.memory_space<vmem>>, vector<1x32xf32>
    %cst = arith.constant dense<0.000000e+00> : vector<8xf32>
    %6 = vector.multi_reduction <add>, %1, %cst [1] : vector<8x32xf32> to vector<8xf32>
    %7 = vector.shape_cast %6 : vector<8xf32> to vector<8x1xf32>
    %cst_9 = arith.constant 3.200000e+01 : f32
    %8 = vector.broadcast %cst_9 : f32 to vector<8x1xf32>
    %9 = arith.divf %7, %8 : vector<8x1xf32>
    %10 = vector.broadcast %9 : vector<8x1xf32> to vector<8x32xf32>
    %11 = arith.subf %1, %10 : vector<8x32xf32>
    %12 = arith.mulf %11, %11 : vector<8x32xf32>
    %cst_10 = arith.constant dense<0.000000e+00> : vector<8xf32>
    %13 = vector.multi_reduction <add>, %12, %cst_10 [1] : vector<8x32xf32> to vector<8xf32>
    %14 = vector.shape_cast %13 : vector<8xf32> to vector<8x1xf32>
    %cst_11 = arith.constant 3.200000e+01 : f32
    %15 = vector.broadcast %cst_11 : f32 to vector<8x1xf32>
    %16 = arith.divf %14, %15 : vector<8x1xf32>
    %17 = vector.broadcast %9 : vector<8x1xf32> to vector<8x32xf32>
    %18 = arith.subf %1, %17 : vector<8x32xf32>
    %cst_12 = arith.constant 9.99999974E-6 : f32
    %19 = vector.broadcast %cst_12 : f32 to vector<8x1xf32>
    %20 = arith.addf %16, %19 : vector<8x1xf32>
    %21 = math.rsqrt %20 : vector<8x1xf32>
    %22 = vector.broadcast %21 : vector<8x1xf32> to vector<8x32xf32>
    %23 = arith.mulf %18, %22 : vector<8x32xf32>
    %24 = vector.broadcast %4 : vector<1x32xf32> to vector<8x32xf32>
    %25 = arith.mulf %23, %24 : vector<8x32xf32>
    %26 = vector.broadcast %5 : vector<1x32xf32> to vector<8x32xf32>
    %27 = arith.addf %25, %26 : vector<8x32xf32>
    %c0_13 = arith.constant 0 : index
    %c0_14 = arith.constant 0 : index
    %28 = vector.load %arg4[%c0_13, %c0_14] : memref<1x32xf32, #tpu.memory_space<vmem>>, vector<1x32xf32>
    %c0_15 = arith.constant 0 : index
    %c0_16 = arith.constant 0 : index
    %29 = vector.load %arg5[%c0_15, %c0_16] : memref<1x32xf32, #tpu.memory_space<vmem>>, vector<1x32xf32>
    %cst_17 = arith.constant dense<0.000000e+00> : vector<8xf32>
    %30 = vector.multi_reduction <add>, %3, %cst_17 [1] : vector<8x32xf32> to vector<8xf32>
    %31 = vector.shape_cast %30 : vector<8xf32> to vector<8x1xf32>
    %cst_18 = arith.constant 3.200000e+01 : f32
    %32 = vector.broadcast %cst_18 : f32 to vector<8x1xf32>
    %33 = arith.divf %31, %32 : vector<8x1xf32>
    %34 = vector.broadcast %33 : vector<8x1xf32> to vector<8x32xf32>
    %35 = arith.subf %3, %34 : vector<8x32xf32>
    %36 = arith.mulf %35, %35 : vector<8x32xf32>
    %cst_19 = arith.constant dense<0.000000e+00> : vector<8xf32>
    %37 = vector.multi_reduction <add>, %36, %cst_19 [1] : vector<8x32xf32> to vector<8xf32>
    %38 = vector.shape_cast %37 : vector<8xf32> to vector<8x1xf32>
    %cst_20 = arith.constant 3.200000e+01 : f32
    %39 = vector.broadcast %cst_20 : f32 to vector<8x1xf32>
    %40 = arith.divf %38, %39 : vector<8x1xf32>
    %41 = vector.broadcast %33 : vector<8x1xf32> to vector<8x32xf32>
    %42 = arith.subf %3, %41 : vector<8x32xf32>
    %cst_21 = arith.constant 9.99999974E-6 : f32
    %43 = vector.broadcast %cst_21 : f32 to vector<8x1xf32>
    %44 = arith.addf %40, %43 : vector<8x1xf32>
    %45 = math.rsqrt %44 : vector<8x1xf32>
    %46 = vector.broadcast %45 : vector<8x1xf32> to vector<8x32xf32>
    %47 = arith.mulf %42, %46 : vector<8x32xf32>
    %48 = vector.broadcast %28 : vector<1x32xf32> to vector<8x32xf32>
    %49 = arith.mulf %47, %48 : vector<8x32xf32>
    %50 = vector.broadcast %29 : vector<1x32xf32> to vector<8x32xf32>
    %51 = arith.addf %49, %50 : vector<8x32xf32>
    %52 = arith.truncf %27 : vector<8x32xf32> to vector<8x32xbf16>
    %c0_22 = arith.constant 0 : index
    %c0_23 = arith.constant 0 : index
    %53 = vector.load %arg6[%c0_22, %c0_23] : memref<32x32xbf16, #tpu.memory_space<vmem>>, vector<32x32xbf16>
    %cst_24 = arith.constant dense<0.000000e+00> : vector<8x32xf32>
    %54 = tpu.matmul %52, %53, %cst_24 {dimension_numbers = #tpu.dot_dimension_numbers<[1], [0], [0], [1], [0, 0, 1, 1], [], []>} : vector<8x32xbf16>, vector<32x32xbf16>, vector<8x32xf32> -> vector<8x32xf32>
    %c0_25 = arith.constant 0 : index
    %c0_26 = arith.constant 0 : index
    %55 = vector.load %arg7[%c0_25, %c0_26] : memref<1x32xf32, #tpu.memory_space<vmem>>, vector<1x32xf32>
    %56 = vector.broadcast %55 : vector<1x32xf32> to vector<8x32xf32>
    %57 = arith.addf %54, %56 : vector<8x32xf32>
    %58 = arith.truncf %51 : vector<8x32xf32> to vector<8x32xbf16>
    %c0_27 = arith.constant 0 : index
    %c0_28 = arith.constant 0 : index
    %59 = vector.load %arg8[%c0_27, %c0_28] : memref<32x64xbf16, #tpu.memory_space<vmem>>, vector<32x64xbf16>
    %cst_29 = arith.constant dense<0.000000e+00> : vector<8x64xf32>
    %60 = tpu.matmul %58, %59, %cst_29 {dimension_numbers = #tpu.dot_dimension_numbers<[1], [0], [0], [1], [0, 0, 1, 1], [], []>} : vector<8x32xbf16>, vector<32x64xbf16>, vector<8x64xf32> -> vector<8x64xf32>
    %c0_30 = arith.constant 0 : index
    %c0_31 = arith.constant 0 : index
    %61 = vector.load %arg9[%c0_30, %c0_31] : memref<1x64xf32, #tpu.memory_space<vmem>>, vector<1x64xf32>
    %62 = vector.broadcast %61 : vector<1x64xf32> to vector<8x64xf32>
    %63 = arith.addf %60, %62 : vector<8x64xf32>
    %64 = vector.extract_strided_slice %63 {offsets = [0, 0], sizes = [8, 32], strides = [1, 1]} : vector<8x64xf32> to vector<8x32xf32>
    %65 = vector.extract_strided_slice %63 {offsets = [0, 32], sizes = [8, 32], strides = [1, 1]} : vector<8x64xf32> to vector<8x32xf32>
    %66 = vector.extract_strided_slice %57 {offsets = [0, 0], sizes = [8, 8], strides = [1, 1]} : vector<8x32xf32> to vector<8x8xf32>
    %67 = vector.extract_strided_slice %57 {offsets = [0, 8], sizes = [8, 8], strides = [1, 1]} : vector<8x32xf32> to vector<8x8xf32>
    %68 = vector.extract_strided_slice %57 {offsets = [0, 16], sizes = [8, 8], strides = [1, 1]} : vector<8x32xf32> to vector<8x8xf32>
    %69 = vector.extract_strided_slice %57 {offsets = [0, 24], sizes = [8, 8], strides = [1, 1]} : vector<8x32xf32> to vector<8x8xf32>
    %70 = vector.shape_cast %66 : vector<8x8xf32> to vector<1x8x8xf32>
    %71 = vector.shape_cast %67 : vector<8x8xf32> to vector<1x8x8xf32>
    %72 = vector.shape_cast %68 : vector<8x8xf32> to vector<1x8x8xf32>
    %73 = vector.shape_cast %69 : vector<8x8xf32> to vector<1x8x8xf32>
    %74 = tpu.concatenate %70, %71, %72, %73 in 0 : vector<1x8x8xf32>, vector<1x8x8xf32>, vector<1x8x8xf32>, vector<1x8x8xf32> -> vector<4x8x8xf32>
    %75 = arith.truncf %74 : vector<4x8x8xf32> to vector<4x8x8xbf16>
    %76 = vector.extract_strided_slice %64 {offsets = [0, 0], sizes = [8, 8], strides = [1, 1]} : vector<8x32xf32> to vector<8x8xf32>
    %77 = vector.extract_strided_slice %64 {offsets = [0, 8], sizes = [8, 8], strides = [1, 1]} : vector<8x32xf32> to vector<8x8xf32>
    %78 = vector.extract_strided_slice %64 {offsets = [0, 16], sizes = [8, 8], strides = [1, 1]} : vector<8x32xf32> to vector<8x8xf32>
    %79 = vector.extract_strided_slice %64 {offsets = [0, 24], sizes = [8, 8], strides = [1, 1]} : vector<8x32xf32> to vector<8x8xf32>
    %80 = vector.shape_cast %76 : vector<8x8xf32> to vector<1x8x8xf32>
    %81 = vector.shape_cast %77 : vector<8x8xf32> to vector<1x8x8xf32>
    %82 = vector.shape_cast %78 : vector<8x8xf32> to vector<1x8x8xf32>
    %83 = vector.shape_cast %79 : vector<8x8xf32> to vector<1x8x8xf32>
    %84 = tpu.concatenate %80, %81, %82, %83 in 0 : vector<1x8x8xf32>, vector<1x8x8xf32>, vector<1x8x8xf32>, vector<1x8x8xf32> -> vector<4x8x8xf32>
    %85 = arith.truncf %84 : vector<4x8x8xf32> to vector<4x8x8xbf16>
    %86 = vector.extract_strided_slice %65 {offsets = [0, 0], sizes = [8, 8], strides = [1, 1]} : vector<8x32xf32> to vector<8x8xf32>
    %87 = vector.extract_strided_slice %65 {offsets = [0, 8], sizes = [8, 8], strides = [1, 1]} : vector<8x32xf32> to vector<8x8xf32>
    %88 = vector.extract_strided_slice %65 {offsets = [0, 16], sizes = [8, 8], strides = [1, 1]} : vector<8x32xf32> to vector<8x8xf32>
    %89 = vector.extract_strided_slice %65 {offsets = [0, 24], sizes = [8, 8], strides = [1, 1]} : vector<8x32xf32> to vector<8x8xf32>
    %90 = vector.shape_cast %86 : vector<8x8xf32> to vector<1x8x8xf32>
    %91 = vector.shape_cast %87 : vector<8x8xf32> to vector<1x8x8xf32>
    %92 = vector.shape_cast %88 : vector<8x8xf32> to vector<1x8x8xf32>
    %93 = vector.shape_cast %89 : vector<8x8xf32> to vector<1x8x8xf32>
    %94 = tpu.concatenate %90, %91, %92, %93 in 0 : vector<1x8x8xf32>, vector<1x8x8xf32>, vector<1x8x8xf32>, vector<1x8x8xf32> -> vector<4x8x8xf32>
    %95 = arith.truncf %94 : vector<4x8x8xf32> to vector<4x8x8xbf16>
    "tpu.trace_start"() <{level = 10 : i32, message = "hqd,hkd->hqk"}> : () -> ()
    %cst_32 = arith.constant dense<0.000000e+00> : vector<4x8x8xf32>
    %96 = tpu.matmul %75, %85, %cst_32 {dimension_numbers = #tpu.dot_dimension_numbers<[2], [2], [1], [1], [0, 0, 0, 1, 1, 1], [0], [0]>} : vector<4x8x8xbf16>, vector<4x8x8xbf16>, vector<4x8x8xf32> -> vector<4x8x8xf32>
    "tpu.trace_stop"() : () -> ()
    %cst_33 = arith.constant 0.353553385 : f32
    %97 = vector.broadcast %cst_33 : f32 to vector<4x8x8xf32>
    %98 = arith.mulf %96, %97 : vector<4x8x8xf32>
    %cst_34 = arith.constant dense<0xFF800000> : vector<4x8xf32>
    %99 = vector.multi_reduction <maximumf>, %98, %cst_34 [2] : vector<4x8x8xf32> to vector<4x8xf32>
    %100 = vector.shape_cast %99 : vector<4x8xf32> to vector<4x8x1xf32>
    %101 = vector.broadcast %100 : vector<4x8x1xf32> to vector<4x8x8xf32>
    %102 = arith.subf %98, %101 : vector<4x8x8xf32>
    %103 = math.exp %102 : vector<4x8x8xf32>
    %cst_35 = arith.constant dense<0.000000e+00> : vector<4x8xf32>
    %104 = vector.multi_reduction <add>, %103, %cst_35 [2] : vector<4x8x8xf32> to vector<4x8xf32>
    %105 = vector.shape_cast %104 : vector<4x8xf32> to vector<4x8x1xf32>
    %106 = tpu.reciprocal %105 {approx = true} : vector<4x8x1xf32> -> vector<4x8x1xf32>
    %107 = vector.broadcast %106 : vector<4x8x1xf32> to vector<4x8x8xf32>
    %108 = arith.mulf %103, %107 : vector<4x8x8xf32>
    %109 = arith.truncf %108 : vector<4x8x8xf32> to vector<4x8x8xbf16>
    "tpu.trace_start"() <{level = 10 : i32, message = "hqk,hkd->hqd"}> : () -> ()
    %cst_36 = arith.constant dense<0.000000e+00> : vector<4x8x8xf32>
    %110 = tpu.matmul %109, %95, %cst_36 {dimension_numbers = #tpu.dot_dimension_numbers<[2], [1], [1], [2], [0, 0, 0, 1, 1, 2], [0], [0]>} : vector<4x8x8xbf16>, vector<4x8x8xbf16>, vector<4x8x8xf32> -> vector<4x8x8xf32>
    "tpu.trace_stop"() : () -> ()
    %111 = vector.extract_strided_slice %110 {offsets = [0, 0, 0], sizes = [1, 8, 8], strides = [1, 1, 1]} : vector<4x8x8xf32> to vector<1x8x8xf32>
    %112 = vector.shape_cast %111 : vector<1x8x8xf32> to vector<8x8xf32>
    %c0_37 = arith.constant 0 : index
    %c0_38 = arith.constant 0 : index
    %113 = vector.load %arg19[%c0_37, %c0_38] : memref<8x32xf32, #tpu.memory_space<vmem>>, vector<8x8xf32>
    tpu.vector_store %arg19[%c0_37, %c0_38], %112 {strides = array<i32>} : memref<8x32xf32, #tpu.memory_space<vmem>>, vector<8x8xf32>,
    %114 = vector.extract_strided_slice %110 {offsets = [1, 0, 0], sizes = [1, 8, 8], strides = [1, 1, 1]} : vector<4x8x8xf32> to vector<1x8x8xf32>
    %115 = vector.shape_cast %114 : vector<1x8x8xf32> to vector<8x8xf32>
    %c0_39 = arith.constant 0 : index
    %c8 = arith.constant 8 : index
    %116 = vector.load %arg19[%c0_39, %c8] : memref<8x32xf32, #tpu.memory_space<vmem>>, vector<8x8xf32>
    tpu.vector_store %arg19[%c0_39, %c8], %115 {strides = array<i32>} : memref<8x32xf32, #tpu.memory_space<vmem>>, vector<8x8xf32>,
    %117 = vector.extract_strided_slice %110 {offsets = [2, 0, 0], sizes = [1, 8, 8], strides = [1, 1, 1]} : vector<4x8x8xf32> to vector<1x8x8xf32>
    %118 = vector.shape_cast %117 : vector<1x8x8xf32> to vector<8x8xf32>
    %c0_40 = arith.constant 0 : index
    %c16 = arith.constant 16 : index
    %119 = vector.load %arg19[%c0_40, %c16] : memref<8x32xf32, #tpu.memory_space<vmem>>, vector<8x8xf32>
    tpu.vector_store %arg19[%c0_40, %c16], %118 {strides = array<i32>} : memref<8x32xf32, #tpu.memory_space<vmem>>, vector<8x8xf32>,
    %120 = vector.extract_strided_slice %110 {offsets = [3, 0, 0], sizes = [1, 8, 8], strides = [1, 1, 1]} : vector<4x8x8xf32> to vector<1x8x8xf32>
    %121 = vector.shape_cast %120 : vector<1x8x8xf32> to vector<8x8xf32>
    %c0_41 = arith.constant 0 : index
    %c24 = arith.constant 24 : index
    %122 = vector.load %arg19[%c0_41, %c24] : memref<8x32xf32, #tpu.memory_space<vmem>>, vector<8x8xf32>
    tpu.vector_store %arg19[%c0_41, %c24], %121 {strides = array<i32>} : memref<8x32xf32, #tpu.memory_space<vmem>>, vector<8x8xf32>,
    %c0_42 = arith.constant 0 : index
    %c0_43 = arith.constant 0 : index
    %123 = vector.load %arg19[%c0_42, %c0_43] : memref<8x32xf32, #tpu.memory_space<vmem>>, vector<8x32xf32>
    %124 = arith.truncf %123 : vector<8x32xf32> to vector<8x32xbf16>
    %c0_44 = arith.constant 0 : index
    %c0_45 = arith.constant 0 : index
    %125 = vector.load %arg10[%c0_44, %c0_45] : memref<32x32xbf16, #tpu.memory_space<vmem>>, vector<32x32xbf16>
    %cst_46 = arith.constant dense<0.000000e+00> : vector<8x32xf32>
    %126 = tpu.matmul %124, %125, %cst_46 {dimension_numbers = #tpu.dot_dimension_numbers<[1], [0], [0], [1], [0, 0, 1, 1], [], []>} : vector<8x32xbf16>, vector<32x32xbf16>, vector<8x32xf32> -> vector<8x32xf32>
    %c0_47 = arith.constant 0 : index
    %c0_48 = arith.constant 0 : index
    %127 = vector.load %arg11[%c0_47, %c0_48] : memref<1x32xf32, #tpu.memory_space<vmem>>, vector<1x32xf32>
    %128 = vector.broadcast %127 : vector<1x32xf32> to vector<8x32xf32>
    %129 = arith.addf %126, %128 : vector<8x32xf32>
    %130 = arith.addf %1, %129 : vector<8x32xf32>
    %c0_49 = arith.constant 0 : index
    %c0_50 = arith.constant 0 : index
    %131 = vector.load %arg12[%c0_49, %c0_50] : memref<1x32xf32, #tpu.memory_space<vmem>>, vector<1x32xf32>
    %c0_51 = arith.constant 0 : index
    %c0_52 = arith.constant 0 : index
    %132 = vector.load %arg13[%c0_51, %c0_52] : memref<1x32xf32, #tpu.memory_space<vmem>>, vector<1x32xf32>
    %cst_53 = arith.constant dense<0.000000e+00> : vector<8xf32>
    %133 = vector.multi_reduction <add>, %130, %cst_53 [1] : vector<8x32xf32> to vector<8xf32>
    %134 = vector.shape_cast %133 : vector<8xf32> to vector<8x1xf32>
    %cst_54 = arith.constant 3.200000e+01 : f32
    %135 = vector.broadcast %cst_54 : f32 to vector<8x1xf32>
    %136 = arith.divf %134, %135 : vector<8x1xf32>
    %137 = vector.broadcast %136 : vector<8x1xf32> to vector<8x32xf32>
    %138 = arith.subf %130, %137 : vector<8x32xf32>
    %139 = arith.mulf %138, %138 : vector<8x32xf32>
    %cst_55 = arith.constant dense<0.000000e+00> : vector<8xf32>
    %140 = vector.multi_reduction <add>, %139, %cst_55 [1] : vector<8x32xf32> to vector<8xf32>
    %141 = vector.shape_cast %140 : vector<8xf32> to vector<8x1xf32>
    %cst_56 = arith.constant 3.200000e+01 : f32
    %142 = vector.broadcast %cst_56 : f32 to vector<8x1xf32>
    %143 = arith.divf %141, %142 : vector<8x1xf32>
    %144 = vector.broadcast %136 : vector<8x1xf32> to vector<8x32xf32>
    %145 = arith.subf %130, %144 : vector<8x32xf32>
    %cst_57 = arith.constant 9.99999974E-6 : f32
    %146 = vector.broadcast %cst_57 : f32 to vector<8x1xf32>
    %147 = arith.addf %143, %146 : vector<8x1xf32>
    %148 = math.rsqrt %147 : vector<8x1xf32>
    %149 = vector.broadcast %148 : vector<8x1xf32> to vector<8x32xf32>
    %150 = arith.mulf %145, %149 : vector<8x32xf32>
    %151 = vector.broadcast %131 : vector<1x32xf32> to vector<8x32xf32>
    %152 = arith.mulf %150, %151 : vector<8x32xf32>
    %153 = vector.broadcast %132 : vector<1x32xf32> to vector<8x32xf32>
    %154 = arith.addf %152, %153 : vector<8x32xf32>
    %155 = arith.truncf %154 : vector<8x32xf32> to vector<8x32xbf16>
    %c0_58 = arith.constant 0 : index
    %c0_59 = arith.constant 0 : index
    %156 = vector.load %arg14[%c0_58, %c0_59] : memref<32x128xbf16, #tpu.memory_space<vmem>>, vector<32x128xbf16>
    %cst_60 = arith.constant dense<0.000000e+00> : vector<8x128xf32>
    %157 = tpu.matmul %155, %156, %cst_60 {dimension_numbers = #tpu.dot_dimension_numbers<[1], [0], [0], [1], [0, 0, 1, 1], [], []>} : vector<8x32xbf16>, vector<32x128xbf16>, vector<8x128xf32> -> vector<8x128xf32>
    %c0_61 = arith.constant 0 : index
    %c0_62 = arith.constant 0 : index
    %158 = vector.load %arg15[%c0_61, %c0_62] : memref<1x128xf32, #tpu.memory_space<vmem>>, vector<1x128xf32>
    %159 = vector.broadcast %158 : vector<1x128xf32> to vector<8x128xf32>
    %160 = arith.addf %157, %159 : vector<8x128xf32>
    %cst_63 = arith.constant 1.702000e+00 : f32
    %161 = vector.broadcast %cst_63 : f32 to vector<8x128xf32>
    %162 = arith.mulf %161, %160 : vector<8x128xf32>
    %163 = arith.negf %162 : vector<8x128xf32>
    %164 = math.exp %163 : vector<8x128xf32>
    %cst_64 = arith.constant 1.000000e+00 : f32
    %165 = vector.broadcast %cst_64 : f32 to vector<8x128xf32>
    %166 = arith.addf %165, %164 : vector<8x128xf32>
    %167 = arith.divf %165, %166 : vector<8x128xf32>
    %168 = arith.mulf %160, %167 : vector<8x128xf32>
    %169 = arith.truncf %168 : vector<8x128xf32> to vector<8x128xbf16>
    %c0_65 = arith.constant 0 : index
    %c0_66 = arith.constant 0 : index
    %170 = vector.load %arg16[%c0_65, %c0_66] : memref<128x32xbf16, #tpu.memory_space<vmem>>, vector<128x32xbf16>
    %cst_67 = arith.constant dense<0.000000e+00> : vector<8x32xf32>
    %171 = tpu.matmul %169, %170, %cst_67 {dimension_numbers = #tpu.dot_dimension_numbers<[1], [0], [0], [1], [0, 0, 1, 1], [], []>} : vector<8x128xbf16>, vector<128x32xbf16>, vector<8x32xf32> -> vector<8x32xf32>
    %c0_68 = arith.constant 0 : index
    %c0_69 = arith.constant 0 : index
    %172 = vector.load %arg17[%c0_68, %c0_69] : memref<1x32xf32, #tpu.memory_space<vmem>>, vector<1x32xf32>
    %173 = vector.broadcast %172 : vector<1x32xf32> to vector<8x32xf32>
    %174 = arith.addf %171, %173 : vector<8x32xf32>
    %175 = arith.addf %130, %174 : vector<8x32xf32>
    %c0_70 = arith.constant 0 : index
    %c0_71 = arith.constant 0 : index
    %c0_72 = arith.constant 0 : index
    %176 = vector.load %arg18[%c0_70, %c0_71, %c0_72] : memref<1x8x32xf32, #tpu.memory_space<vmem>>, vector<1x8x32xf32>
    %177 = vector.shape_cast %176 : vector<1x8x32xf32> to vector<8x32xf32>
    %178 = vector.shape_cast %175 : vector<8x32xf32> to vector<1x8x32xf32>
    tpu.vector_store %arg18[%c0_70, %c0_71, %c0_72], %178 {strides = array<i32>} : memref<1x8x32xf32, #tpu.memory_space<vmem>>, vector<1x8x32xf32>,
    return
  }
  func.func @transform_0(%arg0: i32, %arg1: i32) -> (i32, i32, i32) {
    %c0_i32 = arith.constant 0 : i32
    %c0_i32_0 = arith.constant 0 : i32
    return %arg0, %arg1, %c0_i32 : i32, i32, i32
  }
  func.func @transform_1(%arg0: i32, %arg1: i32) -> (i32, i32, i32) {
    %c0_i32 = arith.constant 0 : i32
    %c0_i32_0 = arith.constant 0 : i32
    %c0_i32_1 = arith.constant 0 : i32
    return %arg0, %c0_i32, %c0_i32_0 : i32, i32, i32
  }
  func.func @transform_2(%arg0: i32, %arg1: i32) -> (i32, i32) {
    %c0_i32 = arith.constant 0 : i32
    %c0_i32_0 = arith.constant 0 : i32
    %c0_i32_1 = arith.constant 0 : i32
    return %c0_i32, %c0_i32_0 : i32, i32
  }
  func.func @transform_3(%arg0: i32, %arg1: i32) -> (i32, i32) {
    %c0_i32 = arith.constant 0 : i32
    %c0_i32_0 = arith.constant 0 : i32
    %c0_i32_1 = arith.constant 0 : i32
    return %c0_i32, %c0_i32_0 : i32, i32
  }
  func.func @transform_4(%arg0: i32, %arg1: i32) -> (i32, i32) {
    %c0_i32 = arith.constant 0 : i32
    %c0_i32_0 = arith.constant 0 : i32
    %c0_i32_1 = arith.constant 0 : i32
    return %c0_i32, %c0_i32_0 : i32, i32
  }
  func.func @transform_5(%arg0: i32, %arg1: i32) -> (i32, i32) {
    %c0_i32 = arith.constant 0 : i32
    %c0_i32_0 = arith.constant 0 : i32
    %c0_i32_1 = arith.constant 0 : i32
    return %c0_i32, %c0_i32_0 : i32, i32
  }
  func.func @transform_6(%arg0: i32, %arg1: i32) -> (i32, i32) {
    %c0_i32 = arith.constant 0 : i32
    %c0_i32_0 = arith.constant 0 : i32
    %c0_i32_1 = arith.constant 0 : i32
    return %c0_i32, %c0_i32_0 : i32, i32
  }
  func.func @transform_7(%arg0: i32, %arg1: i32) -> (i32, i32) {
    %c0_i32 = arith.constant 0 : i32
    %c0_i32_0 = arith.constant 0 : i32
    %c0_i32_1 = arith.constant 0 : i32
    return %c0_i32, %c0_i32_0 : i32, i32
  }
  func.func @transform_8(%arg0: i32, %arg1: i32) -> (i32, i32) {
    %c0_i32 = arith.constant 0 : i32
    %c0_i32_0 = arith.constant 0 : i32
    %c0_i32_1 = arith.constant 0 : i32
    return %c0_i32, %c0_i32_0 : i32, i32
  }
  func.func @transform_9(%arg0: i32, %arg1: i32) -> (i32, i32) {
    %c0_i32 = arith.constant 0 : i32
    %c0_i32_0 = arith.constant 0 : i32
    %c0_i32_1 = arith.constant 0 : i32
    return %c0_i32, %c0_i32_0 : i32, i32
  }
  func.func @transform_10(%arg0: i32, %arg1: i32) -> (i32, i32) {
    %c0_i32 = arith.constant 0 : i32
    %c0_i32_0 = arith.constant 0 : i32
    %c0_i32_1 = arith.constant 0 : i32
    return %c0_i32, %c0_i32_0 : i32, i32
  }
  func.func @transform_11(%arg0: i32, %arg1: i32) -> (i32, i32) {
    %c0_i32 = arith.constant 0 : i32
    %c0_i32_0 = arith.constant 0 : i32
    %c0_i32_1 = arith.constant 0 : i32
    return %c0_i32, %c0_i32_0 : i32, i32
  }
  func.func @transform_12(%arg0: i32, %arg1: i32) -> (i32, i32) {
    %c0_i32 = arith.constant 0 : i32
    %c0_i32_0 = arith.constant 0 : i32
    %c0_i32_1 = arith.constant 0 : i32
    return %c0_i32, %c0_i32_0 : i32, i32
  }
  func.func @transform_13(%arg0: i32, %arg1: i32) -> (i32, i32) {
    %c0_i32 = arith.constant 0 : i32
    %c0_i32_0 = arith.constant 0 : i32
    %c0_i32_1 = arith.constant 0 : i32
    return %c0_i32, %c0_i32_0 : i32, i32
  }
  func.func @transform_14(%arg0: i32, %arg1: i32) -> (i32, i32) {
    %c0_i32 = arith.constant 0 : i32
    %c0_i32_0 = arith.constant 0 : i32
    %c0_i32_1 = arith.constant 0 : i32
    return %c0_i32, %c0_i32_0 : i32, i32
  }
  func.func @transform_15(%arg0: i32, %arg1: i32) -> (i32, i32) {
    %c0_i32 = arith.constant 0 : i32
    %c0_i32_0 = arith.constant 0 : i32
    %c0_i32_1 = arith.constant 0 : i32
    return %c0_i32, %c0_i32_0 : i32, i32
  }
  func.func @transform_16(%arg0: i32, %arg1: i32) -> (i32, i32, i32) {
    %c0_i32 = arith.constant 0 : i32
    %c0_i32_0 = arith.constant 0 : i32
    return %arg0, %arg1, %c0_i32 : i32, i32, i32
  }
}

</mosaic_0001>

<bundles_post_ra>
// kernel: transformer_forward.2
= control target key start
LH: loop header
LB: loop body
LE: loop exit
PB: predicated region body
PF: predicated region fallthrough
CT: control target
= control target key end

     0   :  { %s1980_s21 = smov 0   ;;  %s1982_s22 = smov 0   ;;  %s2208_s0 = inlined_call_operand.vmem [shape: f32[2,8,32], index: 0, kind: input, shape index: {}, may-alias: {0,1}]   ;;  %s2209_s1 = inlined_call_operand.vmem [shape: f32[2,8,32], index: 1, kind: input, shape index: {}, may-alias: {0,1}]   ;;  %s2210_s2 = inlined_call_operand.vmem [shape: f32[1,32], index: 2, kind: input, shape index: {}]   ;;  %s2211_s3 = inlined_call_operand.vmem [shape: f32[1,32], index: 3, kind: input, shape index: {}]   ;;  %s2212_s4 = inlined_call_operand.vmem [shape: bf16[32,32], index: 4, kind: input, shape index: {}]   ;;  %s2213_s5 = inlined_call_operand.vmem [shape: f32[1,32], index: 5, kind: input, shape index: {}]   ;;  %s2214_s6 = inlined_call_operand.vmem [shape: bf16[32,64], index: 6, kind: input, shape index: {}]   ;;  %s2215_s7 = inlined_call_operand.vmem [shape: f32[1,64], index: 7, kind: input, shape index: {}]   ;;  %s2216_s8 = inlined_call_operand.vmem [shape: bf16[32,32], index: 8, kind: input, shape index: {}]   ;;  %s2217_s9 = inlined_call_operand.vmem [shape: f32[1,32], index: 9, kind: input, shape index: {}]   ;;  %s2218_s10 = inlined_call_operand.vmem [shape: f32[1,32], index: 10, kind: input, shape index: {}]   ;;  %s2219_s11 = inlined_call_operand.vmem [shape: f32[1,32], index: 11, kind: input, shape index: {}]   ;;  %s2220_s12 = inlined_call_operand.vmem [shape: bf16[32,128], index: 12, kind: input, shape index: {}]   ;;  %s2221_s13 = inlined_call_operand.vmem [shape: f32[1,128], index: 13, kind: input, shape index: {}]   ;;  %s2222_s14 = inlined_call_operand.vmem [shape: bf16[128,32], index: 14, kind: input, shape index: {}]   ;;  %s2223_s15 = inlined_call_operand.vmem [shape: f32[1,32], index: 15, kind: input, shape index: {}]   ;;  %s2224_s16 = inlined_call_operand.vmem [shape: f32[2,8,32], index: 16, kind: output, shape index: {}]  }
   0x1   :  { %2225 = sst [smem:[#allocation3_spill]] %s2208_s0  ;;  %s1984_s23 = smov 0  }
   0x2 LB: > { %s38_s24 = sadd.s32 1, %s1880_s22  ;;  %p1606_p0 = scmp.ge.s32.totalorder %s1884_s23, 1  ;;  %s1884_s23 = sphi %s1984_s23, %s26_s23   ;;  %s1880_s22 = sphi %s1982_s22, %s2228_s22   ;;  %s1876_s21 = sphi %s1980_s21, %s2227_s21  }
   0x3   : > { %p40_p1 = scmp.ge.s32.totalorder %s38_s24, 2  ;;  %p489_p2 = scmp.lt.s32.totalorder %s1884_s23, 3 }
   0x5   : > { %s2230_s24 = smov (%p40_p1, %s38_s24), 0  ;;  %p490_p3 = pnand %p1606_p0, %p489_p2 }
   0x6   : > { %p547_p4 = scmp.lt.s32.totalorder (!%p490_p3), %s1876_s21, 1  ;;  %vm570_vm0 = vcmask (!%p490_p3), 261120   ;;  %s2226_s28 = sld [smem:[#allocation3_spill]] (!%p490_p3)  ;;  %v1820_v14 = vld [vmem:[%s2212_s4] sm:$0xff] (!%p490_p3)   ;;  %v1886_v15 = vmov (!%p490_p3), 0.0   ;;  %v1821_v16 = vld [vmem:[%s2212_s4 + $0x8] sm:$0xff] (!%p490_p3)  }
   0x7   : > { %493 = sbr.rel (%p490_p3) target bundleno = 2599 (0xa27), region = 84  ;;  %1687 = vmatprep.subr.bf16.mxu1 (!%p490_p3), %v1886_v15  ;;  %1715 = vmatprep.subr.bf16.mxu0 (!%p490_p3), %v1886_v15  ;;  %vm1887_vm1 = vmmov (!%p490_p3), 0   ;;  %v1610_v24 = vld [vmem:[%s2210_s2] ss:$0 sm:$0xff] (!%p490_p3)  ;;  %v1823_v34 = vld [vmem:[%s2214_s6 + $0x8] sm:$0xff] (!%p490_p3)   ;;  %vm776_vm2 = vcmask (!%p490_p3), 64512  }
   0x8   : > { %1688 = vmatpush3.bf16.msra.mxu1 (!%p490_p3), %v1820_v14  ;;  %1691 = vmatprep.mubr.msk.bf16.mxu1 (!%p490_p3), %vm1887_vm1, %v1886_v15  ;;  %v1611_v26 = vld [vmem:[%s2211_s3] ss:$0 sm:$0xff] (!%p490_p3)  ;;  %s1891_s30 = smov (!%p490_p3), 96   ;;  %vm1019_vm3 = vcmask (!%p490_p3), 1043456   ;;  %s1892_s0 = smov (!%p490_p3), 8   ;;  %vm1215_vm4 = vcmask (!%p490_p3), 130112  }
   0x9   : > { %1689 = vmatprep.subr.bf16.mxu1 (!%p490_p3), %v1886_v15  ;;  %1717 = vmatprep.mubr.msk.bf16.mxu0 (!%p490_p3), %vm1887_vm1, %v1886_v15  ;;  %v1822_v31 = vld [vmem:[%s2214_s6] sm:$0xff] (!%p490_p3)   ;;  %s1894_s26 = smov (!%p490_p3), 24   ;;  %vm1221_vm5 = vcmask (!%p490_p3), 195712   ;;  %vm1227_vm6 = vcmask (!%p490_p3), 261312  }
   0xa   : > { %v1612_v37 = vld [vmem:[%s2213_s5] ss:$0 sm:$0xff] (!%p490_p3) }
   0xb   : > { %v1616_v43 = vld [vmem:[%s2215_s7] ss:$0 sm:$0xff] (!%p490_p3) }
   0xc   : > { %1690 = vmatpush3.bf16.msra.mxu1 (!%p490_p3), %v1821_v16 }
   0xd   : > { %1695 = vmatprep.subr.bf16.mxu1 (!%p490_p3), %v1886_v15 }
   0xe   : > { %s2232_s21 = smov (!%p547_p4, %s1876_s21), 1 }
   0xf   : > { %s1998_s25 = sshll.u32 %s2232_s21, 3  ;;  %s1888_s21 = smov 120  }
  0x10   : > { %s553_s29 = scalar_lea.vmem %s2226_s28, %s1998_s25  ;;  %s557_s17 = scalar_lea.vmem %s2209_s1, %s1998_s25 }
  0x11   : > { %v2004_v0 = vld [vmem:[%s553_s29] sm:$0xff]  ;;  %s1889_s28 = smov 112   ;;  %s1890_s29 = smov 104  }
  0x12   : > { %v571_v1 = vsel %vm570_vm0, %v2004_v0, 0.0  ;;  %v567_v2 = vld [vmem:[%s557_s17] sm:$0xff]  ;;  %s1893_s17 = smov 16  }
  0x13   : > { %572 = vadd.xlane.f32.xlu0 %v571_v1  ;;  %v599_v3 = vsel %vm570_vm0, %v567_v2, 0.0 }
  0x17   : > { %600 = vadd.xlane.f32.xlu0 %v599_v3 }
  0xa0   : > { %v573_v4 = vpop.xlane.xlu0 %572 }
  0xa1   : > { %v575_v5 = vmul.f32 0.03125, %v573_v4 }
  0xa3   : > { %v576_v6 = vsub.f32 %v2004_v0, %v575_v5 }
  0xa4   : > { %v601_v7 = vpop.xlane.xlu0 %600 }
  0xa5   : > { %v602_v8 = vmul.f32 0.03125, %v601_v7  ;;  %v577_v9 = vmul.f32 %v576_v6, %v576_v6 }
  0xa7   : > { %v603_v10 = vsub.f32 %v567_v2, %v602_v8  ;;  %v578_v11 = vsel %vm570_vm0, %v577_v9, 0.0 }
  0xa8   : > { %579 = vadd.xlane.f32.xlu1 %v578_v11 }
  0xa9   : > { %v604_v12 = vmul.f32 %v603_v10, %v603_v10 }
  0xab   : > { %v605_v13 = vsel %vm570_vm0, %v604_v12, 0.0 }
  0xac   : > { %606 = vadd.xlane.f32.xlu1 %v605_v13 }
 0x135   : > { %v580_v17 = vpop.xlane.xlu1 %579 }
 0x136   : > { %v581_v18 = vmul.f32 0.03125, %v580_v17 }
 0x138   : > { %v582_v19 = vadd.f32 1e-05, %v581_v18 }
 0x139   : > { %v607_v20 = vpop.xlane.xlu1 %606 }
 0x13a   : > { %1836 = vrsqrt.f32 %v582_v19  ;;  %v608_v21 = vmul.f32 0.03125, %v607_v20 }
 0x13c   : > { %v609_v22 = vadd.f32 1e-05, %v608_v21 }
 0x13e   : > { %1838 = vrsqrt.f32 %v609_v22 }
 0x144   : > { %v1837_v23 = vpop.eup %1836 }
 0x145   : > { %v584_v25 = vmul.f32 %v1837_v23, %v576_v6 }
 0x147   : > { %v591_v27 = vmul.f32 %v1610_v24, %v584_v25 }
 0x148   : > { %v1839_v28 = vpop.eup %1838 }
 0x149   : > { %v611_v29 = vmul.f32 %v1839_v28, %v603_v10  ;;  %v598_v30 = vadd.f32 %v1611_v26, %v591_v27 }
 0x14b   : > { %v612_v32 = vmul.f32 %v1610_v24, %v611_v29  ;;  %v614_v33 = vpack.c.bf16 %v598_v30, %v598_v30 }
 0x14d   : > { %1692 = vmatmul.mubr.msk.bf16.vlgmr.msra.gmra.mrb[0].mxu1 %vm570_vm0, %v614_v33  ;;  %v613_v35 = vadd.f32 %v1611_v26, %v612_v32 }
 0x14e   : > { %1696 = vmatpush3.bf16.msra.mxu1 %v1822_v31  ;;  %1699 = vmatprep.mubr.msk.bf16.mxu1 %vm1887_vm1, %v1886_v15 }
 0x14f   : > { %1697 = vmatprep.subr.bf16.mxu1 %v1886_v15  ;;  %v681_v36 = vpack.c.bf16 %v613_v35, %v613_v35 }
 0x152   : > { %1698 = vmatpush3.bf16.msra.mxu1 %v1823_v34 }
 0x153   : > { %1703 = vmatprep.subr.bf16.mxu1 %v1886_v15 }
 0x155   : > { %1700 = vmatmul.mubr.msk.bf16.vlgmr.msra.gmra.mrb[4].mxu1 %vm570_vm0, %v681_v36 }
 0x156   : > { %1705 = vmatprep.mubr.msk.bf16.mxu1 %vm1887_vm1, %v1886_v15 }
 0x220   : > { %v675_v38 = vpop.f32.mrb[0].mxu1 }
 0x221   : > { %v676_v39 = vadd.f32 %v1612_v37, %v675_v38  ;;  %v1693_v40 = vpop.f32.mrb[1].mxu1 }
 0x222   : > { %v678_v41 = vpop.f32.mrb[2].mxu1 }
 0x223   : > { %v1694_v42 = vpop.f32.mrb[3].mxu1  ;;  %749 = vrot.lane.b32.xlu1 %v676_v39, %s1888_s21  ;;  %v758_v51 = vpack.c.bf16 %v676_v39, %v676_v39 }
 0x228   : > { %v742_v44 = vpop.f32.mrb[4].mxu1 }
 0x229   : > { %v743_v45 = vadd.f32 %v1616_v43, %v742_v44  ;;  %v1701_v46 = vpop.f32.mrb[5].mxu1 }
 0x22a   : > { %v745_v47 = vpop.f32.mrb[6].mxu1 }
 0x22b   : > { %766 = vrot.lane.b32.xlu1 %v743_v45, %s1889_s28  ;;  %763 = vrot.lane.b32.xlu0 %v743_v45, %s1888_s21  ;;  %v1702_v48 = vpop.f32.mrb[7].mxu1  ;;  %v2056_v49 = vpack.c.bf16 %v743_v45, %v743_v45 }
 0x22d   : > { %v781_v50 = vsel %vm776_vm2, %v2056_v49, 0 }
 0x22e   : > { %1704 = vmatpush3.bf16.xpose.msra.mxu1 %v781_v50 }
 0x22f   : > { %769 = vrot.lane.b32.xlu1 %v743_v45, %s1890_s29  ;;  %752 = vrot.lane.b32.xlu0 %v676_v39, %s1889_s28 }
 0x230   : > { %1709 = vmatprep.subr.bf16.mxu1 %v1886_v15 }
 0x233   : > { %755 = vrot.lane.b32.xlu1 %v676_v39, %s1890_s29 }
 0x235   : > { %1706 = vmatmul.mubr.msk.bf16.vlgmr.msra.gmra.mrb[8].mxu1 %vm776_vm2, %v758_v51 }
 0x236   : > { %1711 = vmatprep.mubr.msk.bf16.mxu1 %vm1887_vm1, %v1886_v15 }
 0x295   : > { %v750_v52 = vpop.permute.xlu1 %749 }
 0x296   : > { %v759_v62 = vpack.c.bf16 %v750_v52, %v750_v52 }
 0x29d   : > { %v764_v53 = vpop.permute.xlu0 %763  ;;  %v767_v54 = vpop.permute.xlu1 %766 }
 0x29e   : > { %v2064_v55 = vpack.c.bf16 %v764_v53, %v764_v53  ;;  %v2066_v56 = vpack.c.bf16 %v767_v54, %v767_v54 }
 0x2a0   : > { %v827_v57 = vsel %vm776_vm2, %v2064_v55, 0  ;;  %v873_v58 = vsel %vm776_vm2, %v2066_v56, 0 }
 0x2a1   : > { %1710 = vmatpush3.bf16.xpose.msra.mxu1 %v827_v57  ;;  %1716 = vmatpush3.bf16.xpose.msra.mxu0 %v873_v58  ;;  %v770_v59 = vpop.permute.xlu1 %769  ;;  %v753_v60 = vpop.permute.xlu0 %752 }
 0x2a2   : > { %1721 = vmatprep.subr.bf16.mxu1 %v1886_v15  ;;  %1727 = vmatprep.subr.bf16.mxu0 %v1886_v15  ;;  %v2074_v61 = vpack.c.bf16 %v770_v59, %v770_v59  ;;  %v760_v63 = vpack.c.bf16 %v753_v60, %v753_v60 }
 0x2a4   : > { %v919_v1 = vsel %vm776_vm2, %v2074_v61, 0 }
 0x2a5   : > { %v756_v2 = vpop.permute.xlu1 %755 }
 0x2a6   : > { %v761_v3 = vpack.c.bf16 %v756_v2, %v756_v2 }
 0x2a8   : > { %1712 = vmatmul.mubr.msk.bf16.vlgmr.msra.gmra.mrb[12].mxu1 %vm776_vm2, %v759_v62  ;;  %1718 = vmatmul.mubr.msk.bf16.vlgmr.msra.gmra.mrb[0].mxu0 %vm776_vm2, %v760_v63 }
 0x2a9   : > { %1722 = vmatpush3.bf16.xpose.msra.mxu1 %v919_v1  ;;  %1723 = vmatprep.mubr.msk.bf16.mxu1 %vm1887_vm1, %v1886_v15 }
 0x2aa   : > { %1733 = vmatprep.subr.bf16.mxu1 %v1886_v15  ;;  %1729 = vmatprep.mubr.msk.bf16.mxu0 %vm1887_vm1, %v1886_v15 }
 0x2b0   : > { %1724 = vmatmul.mubr.msk.bf16.vlgmr.msra.gmra.mrb[16].mxu1 %vm776_vm2, %v761_v3 }
 0x2b1   : > { %1735 = vmatprep.mubr.msk.bf16.mxu1 %vm1887_vm1, %v1886_v15 }
 0x308   : > { %v817_v4 = vpop.f32.mrb[8].mxu1 }
 0x309   : > { %v961_v5 = vmul.f32 0.35355338, %v817_v4  ;;  %v1707_v6 = vpop.f32.mrb[9].mxu1 }
 0x30a   : > { %v820_v7 = vpop.f32.mrb[10].mxu1 }
 0x30b   : > { %v1708_v8 = vpop.f32.mrb[11].mxu1  ;;  %v965_v9 = vsel %vm776_vm2, %v961_v5, -inf }
 0x30c   : > { %966 = vmax.xlane.f32.xlu0 %v965_v9 }
 0x37b   : > { %v863_v10 = vpop.f32.mrb[12].mxu1  ;;  %v909_v11 = vpop.f32.mrb[0].mxu0 }
 0x37c   : > { %v962_v12 = vmul.f32 0.35355338, %v863_v10  ;;  %v963_v13 = vmul.f32 0.35355338, %v909_v11  ;;  %v1713_v14 = vpop.f32.mrb[13].mxu1  ;;  %v1719_v16 = vpop.f32.mrb[1].mxu0 }
 0x37d   : > { %v866_v17 = vpop.f32.mrb[14].mxu1  ;;  %v912_v18 = vpop.f32.mrb[2].mxu0 }
 0x37e   : > { %v1714_v19 = vpop.f32.mrb[15].mxu1  ;;  %v1720_v20 = vpop.f32.mrb[3].mxu0  ;;  %v968_v21 = vsel %vm776_vm2, %v962_v12, -inf  ;;  %v971_v22 = vsel %vm776_vm2, %v963_v13, -inf }
 0x37f   : > { %969 = vmax.xlane.f32.xlu1 %v968_v21  ;;  %972 = vmax.xlane.f32.xlu0 %v971_v22 }
 0x383   : > { %v955_v23 = vpop.f32.mrb[16].mxu1 }
 0x384   : > { %v964_v24 = vmul.f32 0.35355338, %v955_v23  ;;  %v1725_v25 = vpop.f32.mrb[17].mxu1  ;;  %v1824_v23 = vld [vmem:[%s2216_s8] sm:$0xff]  }
 0x385   : > { %v958_v26 = vpop.f32.mrb[18].mxu1 }
 0x386   : > { %v1726_v27 = vpop.f32.mrb[19].mxu1  ;;  %v974_v28 = vsel %vm776_vm2, %v964_v24, -inf }
 0x387   : > { %975 = vmax.xlane.f32.xlu0 %v974_v28 }
 0x399   : > { %v967_v29 = vpop.xlane.xlu0 %966 }
 0x39a   : > { %v977_v30 = vsub.f32 %v961_v5, %v967_v29 }
 0x39c   : > { %v981_v31 = vmul.f32 1.442695, %v977_v30 }
 0x39e   : > { %1840 = vpow2.f32 %v981_v31 }
 0x3a8   : > { %v1841_v32 = vpop.eup %1840 }
 0x3a9   : > { %v989_v33 = vsel %vm776_vm2, %v1841_v32, 0.0 }
 0x3aa   : > { %990 = vadd.xlane.f32.xlu0 %v989_v33 }
 0x40c   : > { %v973_v34 = vpop.xlane.xlu0 %972  ;;  %v970_v35 = vpop.xlane.xlu1 %969 }
 0x40d   : > { %v979_v36 = vsub.f32 %v963_v13, %v973_v34  ;;  %v978_v37 = vsub.f32 %v962_v12, %v970_v35  ;;  %v1628_v34 = vld [vmem:[%s2217_s9] ss:$0 sm:$0xff] }
 0x40f   : > { %v985_v38 = vmul.f32 1.442695, %v979_v36  ;;  %v983_v39 = vmul.f32 1.442695, %v978_v37 }
 0x411   : > { %1842 = vpow2.f32 %v985_v38 }
 0x412   : > { %1844 = vpow2.f32 %v983_v39 }
 0x414   : > { %v976_v44 = vpop.xlane.xlu0 %975 }
 0x415   : > { %v980_v45 = vsub.f32 %v964_v24, %v976_v44  ;;  %v1825_v24 = vld [vmem:[%s2216_s8 + $0x8] sm:$0xff]  }
 0x417   : > { %v987_v46 = vmul.f32 1.442695, %v980_v45 }
 0x419   : > { %1846 = vpow2.f32 %v987_v46 }
 0x41b   : > { %v1843_v40 = vpop.eup %1842 }
 0x41c   : > { %v1845_v41 = vpop.eup %1844  ;;  %v995_v42 = vsel %vm776_vm2, %v1843_v40, 0.0 }
 0x41d   : > { %996 = vadd.xlane.f32.xlu0 %v995_v42  ;;  %v992_v43 = vsel %vm776_vm2, %v1845_v41, 0.0 }
 0x41e   : > { %993 = vadd.xlane.f32.xlu1 %v992_v43 }
 0x423   : > { %v1847_v47 = vpop.eup %1846 }
 0x424   : > { %v998_v48 = vsel %vm776_vm2, %v1847_v47, 0.0 }
 0x42f   : > { %1064 = vrot.lane.b32.xlu1 %v2064_v55, %s1891_s30 }
 0x433   : > { %1113 = vrot.lane.b32.xlu1 %v2066_v56, %s1891_s30  ;;  %1014 = vrot.lane.b32.xlu0 %v2056_v49, %s1891_s30 }
 0x437   : > { %v991_v50 = vpop.xlane.xlu0 %990 }
 0x438   : > { %1848 = vrcp.f32 %v991_v50 }
 0x442   : > { %v1849_v51 = vpop.eup %1848 }
 0x443   : > { %v1005_v54 = vmul.f32 %v1849_v51, %v1841_v32 }
 0x445   : > { %v1009_v58 = vpack.c.bf16 %v1005_v54, %v1005_v54 }
 0x457   : > { %999 = vadd.xlane.f32.xlu1 %v998_v48 }
 0x468   : > { %1162 = vrot.lane.b32.xlu1 %v2074_v61, %s1891_s30 }
 0x4aa   : > { %v997_v52 = vpop.xlane.xlu0 %996 }
 0x4ab   : > { %1850 = vrcp.f32 %v997_v52  ;;  %v994_v53 = vpop.xlane.xlu1 %993 }
 0x4ac   : > { %1852 = vrcp.f32 %v994_v53  ;;  %v1632_v53 = vld [vmem:[%s2218_s10] ss:$0 sm:$0xff] }
 0x4ae   : > { %v1015_v49 = vpop.permute.xlu0 %1014 }
 0x4af   : > { %v1021_v55 = vsel %vm1019_vm3, %v1015_v49, 0  ;;  %v1065_v56 = vpop.permute.xlu1 %1064  ;;  %v1633_v49 = vld [vmem:[%s2219_s11] ss:$0 sm:$0xff] }
 0x4b0   : > { %v1070_v57 = vsel %vm1019_vm3, %v1065_v56, 0  ;;  %1728 = vmatpush3.bf16.msra.mxu0 %v1021_v55 }
 0x4b1   : > { %1734 = vmatpush3.bf16.msra.mxu1 %v1070_v57  ;;  %1739 = vmatprep.subr.bf16.mxu0 %v1886_v15 }
 0x4b2   : > { %1745 = vmatprep.subr.bf16.mxu1 %v1886_v15 }
 0x4b3   : > { %v1114_v59 = vpop.permute.xlu1 %1113  ;;  %1730 = vmatmul.mubr.msk.bf16.vlgmr.msra.gmra.mrb[4].mxu0 %vm776_vm2, %v1009_v58  ;;  %v1828_v58 = vld [vmem:[%s2222_s14] sm:$0xff]  }
 0x4b4   : > { %v1119_v60 = vsel %vm1019_vm3, %v1114_v59, 0  ;;  %1741 = vmatprep.mubr.msk.bf16.mxu0 %vm1887_vm1, %v1886_v15  ;;  %v1829_v59 = vld [vmem:[%s2222_s14 + $0x8] sm:$0xff]  }
 0x4b5   : > { %v1851_v61 = vpop.eup %1850  ;;  %1740 = vmatpush3.bf16.msra.mxu0 %v1119_v60  ;;  %v1830_v60 = vld [vmem:[%s2222_s14 + $0x10] sm:$0xff]  }
 0x4b6   : > { %v1853_v62 = vpop.eup %1852  ;;  %v1007_v63 = vmul.f32 %v1851_v61, %v1843_v40  ;;  %1751 = vmatprep.subr.bf16.mxu0 %v1886_v15  ;;  %v1831_v61 = vld [vmem:[%s2222_s14 + $0x18] sm:$0xff]  }
 0x4b7   : > { %v1006_v1 = vmul.f32 %v1853_v62, %v1845_v41  ;;  %v1832_v62 = vld [vmem:[%s2222_s14 + $0x20] sm:$0xff]  }
 0x4b8   : > { %v1011_v2 = vpack.c.bf16 %v1007_v63, %v1007_v63  ;;  %v1833_v63 = vld [vmem:[%s2222_s14 + $0x28] sm:$0xff]  }
 0x4b9   : > { %v1010_v3 = vpack.c.bf16 %v1006_v1, %v1006_v1  ;;  %v1834_v1 = vld [vmem:[%s2222_s14 + $0x30] sm:$0xff]  }
 0x4bb   : > { %1736 = vmatmul.mubr.msk.bf16.vlgmr.msra.gmra.mrb[20].mxu1 %vm776_vm2, %v1010_v3  ;;  %1742 = vmatmul.mubr.msk.bf16.vlgmr.msra.gmra.mrb[8].mxu0 %vm776_vm2, %v1011_v2  ;;  %v1835_v2 = vld [vmem:[%s2222_s14 + $0x38] sm:$0xff]   ;;  %v1634_v3 = vld [vmem:[%s2221_s13] ss:$0 sm:$0xff] }
 0x4bc   : > { %1747 = vmatprep.mubr.msk.bf16.mxu1 %vm1887_vm1, %v1886_v15  ;;  %1755 = vmatprep.mubr.msk.bf16.mxu0 %vm1887_vm1, %v1886_v15 }
 0x4bd   : > { %1752 = vmatpush3.bf16.msra.mxu0 %v1824_v23 }
 0x4be   : > { %1753 = vmatprep.subr.bf16.mxu0 %v1886_v15 }
 0x4c1   : > { %1754 = vmatpush3.bf16.msra.mxu0 %v1825_v24 }
 0x4c2   : > { %1767 = vmatprep.subr.bf16.mxu0 %v1886_v15 }
 0x4e4   : > { %v1000_v4 = vpop.xlane.xlu1 %999 }
 0x4e5   : > { %1854 = vrcp.f32 %v1000_v4 }
 0x4e8   : > { %v1163_v5 = vpop.permute.xlu1 %1162 }
 0x4e9   : > { %v1168_v6 = vsel %vm1019_vm3, %v1163_v5, 0 }
 0x4ea   : > { %1746 = vmatpush3.bf16.msra.mxu1 %v1168_v6 }
 0x4eb   : > { %1759 = vmatprep.subr.bf16.mxu1 %v1886_v15 }
 0x4ef   : > { %v1855_v7 = vpop.eup %1854 }
 0x4f0   : > { %v1008_v8 = vmul.f32 %v1855_v7, %v1847_v47  ;;  %v1826_v47 = vld [vmem:[%s2220_s12] sm:$0xff]  }
 0x4f2   : > { %v1012_v9 = vpack.c.bf16 %v1008_v8, %v1008_v8 }
 0x4f4   : > { %1748 = vmatmul.mubr.msk.bf16.vlgmr.msra.gmra.mrb[24].mxu1 %vm776_vm2, %v1012_v9 }
 0x4f5   : > { %1763 = vmatprep.mubr.msk.bf16.mxu1 %vm1887_vm1, %v1886_v15  ;;  %1760 = vmatpush3.bf16.msra.mxu1 %v1826_v47 }
 0x4f6   : > { %1761 = vmatprep.subr.bf16.mxu1 %v1886_v15 }
 0x586   : > { %v1057_v10 = vpop.f32.mrb[4].mxu0 }
 0x587   : > { %1210 = vst.msk [vmem:[#allocation2] sm:$0xff] %vm776_vm2, %v1057_v10  ;;  %v1731_v11 = vpop.f32.mrb[5].mxu0 }
 0x588   : > { %v1060_v12 = vpop.f32.mrb[6].mxu0 }
 0x589   : > { %v1732_v13 = vpop.f32.mrb[7].mxu0 }
 0x58e   : > { %v1106_v14 = vpop.f32.mrb[20].mxu1  ;;  %v1155_v16 = vpop.f32.mrb[8].mxu0 }
 0x58f   : > { %1212 = vrot.lane.b32.xlu0 %v1106_v14, %s1892_s0  ;;  %v1737_v17 = vpop.f32.mrb[21].mxu1  ;;  %1218 = vrot.lane.b32.xlu1 %v1155_v16, %s1893_s17  ;;  %v1743_v18 = vpop.f32.mrb[9].mxu0  ;;  %v1639_v16 = vld [vmem:[%s2223_s15] ss:$0 sm:$0xff] }
 0x590   : > { %v1109_v19 = vpop.f32.mrb[22].mxu1  ;;  %v1158_v20 = vpop.f32.mrb[10].mxu0 }
 0x591   : > { %v1738_v21 = vpop.f32.mrb[23].mxu1  ;;  %v1744_v22 = vpop.f32.mrb[11].mxu0 }
 0x5c7   : > { %v1204_v25 = vpop.f32.mrb[24].mxu1 }
 0x5c8   : > { %1224 = vrot.lane.b32.xlu0 %v1204_v25, %s1894_s26  ;;  %v1749_v26 = vpop.f32.mrb[25].mxu1  ;;  %s564_s26 = scalar_lea.vmem %s2224_s16, %s1998_s25 }
 0x5c9   : > { %v1207_v27 = vpop.f32.mrb[26].mxu1 }
 0x5ca   : > { %v1750_v28 = vpop.f32.mrb[27].mxu1 }
 0x601   : > { %v1213_v29 = vpop.permute.xlu0 %1212  ;;  %v1219_v30 = vpop.permute.xlu1 %1218 }
 0x602   : > { %1216 = vst.msk [vmem:[#allocation2] sm:$0xff] %vm1215_vm4, %v1213_v29 }
 0x603   : > { %1222 = vst.msk [vmem:[#allocation2] sm:$0xff] %vm1221_vm5, %v1219_v30 }
 0x63a   : > { %v1225_v31 = vpop.permute.xlu0 %1224 }
 0x63b   : > { %1228 = vst.msk [vmem:[#allocation2] sm:$0xff] %vm1227_vm6, %v1225_v31 }
 0x642   : > { %v1229_v32 = vld [vmem:[#allocation2] sm:$0xff] }
 0x643   : > { %v1230_v33 = vpack.c.bf16 %v1229_v32, %v1229_v32 }
 0x645   : > { %1756 = vmatmul.mubr.msk.bf16.vlgmr.msra.gmra.mrb[12].mxu0 %vm570_vm0, %v1230_v33 }
 0x646   : > { %1783 = vmatprep.mubr.msk.bf16.mxu0 %vm1887_vm1, %v1886_v15  ;;  %1768 = vmatpush3.bf16.msra.mxu0 %v1828_v58 }
 0x647   : > { %1769 = vmatprep.subr.bf16.mxu0 %v1886_v15 }
 0x64a   : > { %1770 = vmatpush3.bf16.msra.mxu0 %v1829_v59 }
 0x64b   : > { %1771 = vmatprep.subr.bf16.mxu0 %v1886_v15 }
 0x64e   : > { %1772 = vmatpush3.bf16.msra.mxu0 %v1830_v60 }
 0x64f   : > { %1773 = vmatprep.subr.bf16.mxu0 %v1886_v15 }
 0x652   : > { %1774 = vmatpush3.bf16.msra.mxu0 %v1831_v61 }
 0x653   : > { %1775 = vmatprep.subr.bf16.mxu0 %v1886_v15 }
 0x656   : > { %1776 = vmatpush3.bf16.msra.mxu0 %v1832_v62 }
 0x657   : > { %1777 = vmatprep.subr.bf16.mxu0 %v1886_v15 }
 0x65a   : > { %1778 = vmatpush3.bf16.msra.mxu0 %v1833_v63 }
 0x65b   : > { %1779 = vmatprep.subr.bf16.mxu0 %v1886_v15 }
 0x65e   : > { %1780 = vmatpush3.bf16.msra.mxu0 %v1834_v1 }
 0x65f   : > { %1781 = vmatprep.subr.bf16.mxu0 %v1886_v15 }
 0x662   : > { %1782 = vmatpush3.bf16.msra.mxu0 %v1835_v2 }
 0x718   : > { %v1291_v35 = vpop.f32.mrb[12].mxu0 }
 0x719   : > { %v1292_v36 = vadd.f32 %v1628_v34, %v1291_v35  ;;  %v1757_v37 = vpop.f32.mrb[13].mxu0 }
 0x71a   : > { %v1294_v38 = vpop.f32.mrb[14].mxu0 }
 0x71b   : > { %v2136_v39 = vadd.f32 %v1292_v36, %v2004_v0  ;;  %v1758_v40 = vpop.f32.mrb[15].mxu0  ;;  %v1827_v0 = vld [vmem:[%s2220_s12 + $0x8] sm:$0xff]  }
 0x71c   : > { %1762 = vmatpush3.bf16.msra.mxu1 %v1827_v0 }
 0x71d   : > { %v1300_v41 = vsel %vm570_vm0, %v2136_v39, 0.0 }
 0x71e   : > { %1301 = vadd.xlane.f32.xlu1 %v1300_v41 }
 0x7ab   : > { %v1302_v42 = vpop.xlane.xlu1 %1301 }
 0x7ac   : > { %v1303_v43 = vmul.f32 0.03125, %v1302_v42 }
 0x7ae   : > { %v1304_v44 = vsub.f32 %v2136_v39, %v1303_v43 }
 0x7b0   : > { %v1305_v45 = vmul.f32 %v1304_v44, %v1304_v44 }
 0x7b2   : > { %v1306_v46 = vsel %vm570_vm0, %v1305_v45, 0.0 }
 0x7b3   : > { %1307 = vadd.xlane.f32.xlu0 %v1306_v46 }
 0x840   : > { %v1308_v48 = vpop.xlane.xlu0 %1307 }
 0x841   : > { %v1309_v50 = vmul.f32 0.03125, %v1308_v48 }
 0x843   : > { %v1310_v51 = vadd.f32 1e-05, %v1309_v50 }
 0x845   : > { %1856 = vrsqrt.f32 %v1310_v51 }
 0x84f   : > { %v1857_v52 = vpop.eup %1856 }
 0x850   : > { %v1312_v54 = vmul.f32 %v1857_v52, %v1304_v44 }
 0x852   : > { %v1319_v55 = vmul.f32 %v1632_v53, %v1312_v54 }
 0x854   : > { %v1326_v56 = vadd.f32 %v1633_v49, %v1319_v55 }
 0x856   : > { %v1327_v57 = vpack.c.bf16 %v1326_v56, %v1326_v56 }
 0x858   : > { %1764 = vmatmul.mubr.msk.bf16.vlgmr.msra.gmra.mrb[28].mxu1 %vm570_vm0, %v1327_v57 }
 0x92b   : > { %v1388_v4 = vpop.f32.mrb[28].mxu1 }
 0x92c   : > { %v1389_v5 = vadd.f32 %v1634_v3, %v1388_v4  ;;  %v1765_v6 = vpop.f32.mrb[29].mxu1 }
 0x92d   : > { %v1391_v7 = vpop.f32.mrb[30].mxu1 }
 0x92e   : > { %v1638_v8 = vmul.f32 -1.702, %v1389_v5  ;;  %v1766_v9 = vpop.f32.mrb[31].mxu1 }
 0x930   : > { %v1396_v10 = vmul.f32 1.442695, %v1638_v8 }
 0x932   : > { %1858 = vpow2.f32 %v1396_v10 }
 0x93c   : > { %v1859_v11 = vpop.eup %1858 }
 0x93d   : > { %v1398_v15 = vadd.f32 1.0, %v1859_v11 }
 0x93f   : > { %1860 = vrcp.f32 %v1398_v15 }
 0x949   : > { %v1861_v12 = vpop.eup %1860 }
 0x94a   : > { %v1401_v13 = vmul.f32 %v1861_v12, %v1389_v5 }
 0x94c   : > { %v1402_v14 = vpack.c.bf16 %v1401_v13, %v1401_v13 }
 0x94e   : > { %1784 = vmatmul.mubr.bf16.vlgmr.msra.gmra.mrb[16].mxu0 %v1402_v14 }
 0xa21   : > { %v1508_v17 = vpop.f32.mrb[16].mxu0 }
 0xa22   : > { %v1509_v18 = vadd.f32 %v1639_v16, %v1508_v17  ;;  %v1785_v19 = vpop.f32.mrb[17].mxu0 }
 0xa23   : > { %v1511_v20 = vpop.f32.mrb[18].mxu0 }
 0xa24   : > { %v1514_v21 = vadd.f32 %v1509_v18, %v2136_v39  ;;  %v1786_v22 = vpop.f32.mrb[19].mxu0 }
 0xa26   : > { %1515 = vst.msk [vmem:[%s564_s26] sm:$0xff] %vm570_vm0, %v1514_v21 }
 0xa27 PF: > { %s26_s23 = sadd.s32 1, %s1884_s23   ;;  %s2227_s21 = smov %s1880_s22 }
 0xa28   : > { %p23_p5 = scmp.ge.s32.totalorder %s26_s23, 4   ;;  %s2228_s22 = smov %s2230_s24 }
 0xa2a   :  { %25 = sbr.rel (!%p23_p5) target bundleno = 2 (0x2), region = 117 }

</bundles_post_ra>
